<compile_context>
chip_gen: v6e
topology: v6e:2x2x1
jax: 0.10.0
libtpu: 0.0.40
codegen_flags: <defaults>
</compile_context>

<pallas_src>
import functools
import math

import jax
import jax.numpy as jnp
import numpy as np
from jax import lax
from jax.experimental import pallas as pl
from jax.experimental.pallas import tpu as pltpu

W0_INITIAL = 30.0


def _derive_max_tile_pixels(n_frames):
    """Pixel-tile cap from VMEM: double-buffered f32 output (2*F*4 B/px) plus
    ~8 f32 intermediates/px (3 sine planes, gy, gx, acc, slack), kept well under
    the scoped-VMEM limit on every generation (v5e 16 MiB default is raised to
    32 MiB via vmem_limit_bytes; v7x physical VMEM is only 64 MiB)."""
    try:
        info = pltpu.get_tpu_info()
        cap = getattr(info, "vmem_capacity_bytes", 64 * 1024 * 1024)
    except Exception:  # no TPU query available -> conservative v7x figure
        cap = 64 * 1024 * 1024
    budget = min(cap // 4, 12 * 1024 * 1024)
    bytes_per_pixel = 4 * (2 * n_frames + 8)
    return max(1024, min(65536, budget // bytes_per_pixel))


def _pick_rows_per_tile(H, W, max_pixels):
    """Rows per tile: r | H, r % 8 == 0 (or r == H), r*W <= max_pixels.
    Prefer grid length >= 4 (v7x megacore split), then >= 2 (overlap output
    writeback on single-TC parts), then the largest fitting tile."""
    valid = [r for r in range(1, H + 1)
             if H % r == 0 and (r % 8 == 0 or r == H)]
    fit = [r for r in valid if r * W <= max_pixels] or [min(valid)]
    for min_grid in (4, 2, 1):
        tier = [r for r in fit if H // r >= min_grid]
        if tier:
            return max(tier)
    return max(fit)


def _multi_siren_kernel(H, W, rows, n_frames, dim_hidden, w0b_ref, c_ref, out_ref):
    """One tile of `rows` whole image rows, all frames.

    w0b_ref : SMEM (3*dh,)        per hidden unit d: [30*W0[d,0], 30*W0[d,1], 30*b0[d]]
    c_ref   : SMEM (F*(dh+1),)    per frame f: [relu(lat@Wm^T+bm)*w1 (dh entries), b1]
    out_ref : VMEM (F, rows, W)
    """
    f32 = jnp.float32

    # Dense 2-D pixel coordinates: rows over sublanes, cols over lanes.
    r_loc = lax.broadcasted_iota(jnp.int32, (rows, W), 0).astype(f32)
    col = lax.broadcasted_iota(jnp.int32, (rows, W), 1).astype(f32)
    row0 = (pl.program_id(0) * rows).astype(f32)
    gy = (r_loc + row0) * (2.0 / (H - 1)) - 1.0   # == linspace(-1, 1, H)[row]
    gx = col * (2.0 / (W - 1)) - 1.0              # == linspace(-1, 1, W)[col]

    # Exactly dim_hidden dense sine planes (no zero-padded sublanes).
    s = [jnp.sin(w0b_ref[3 * d] * gy + w0b_ref[3 * d + 1] * gx + w0b_ref[3 * d + 2])
         for d in range(dim_hidden)]

    # Per-frame combine: out[f] = sum_d c[f,d] * s[d] + b1 (b1 stored at col dh).
    stride = dim_hidden + 1
    for f in range(n_frames):
        acc = s[0] * c_ref[f * stride] + c_ref[f * stride + dim_hidden]
        for d in range(1, dim_hidden):
            acc = acc + s[d] * c_ref[f * stride + d]
        out_ref[f] = acc


def multi_siren_forward(img, params, latents, img_size, *, max_tile_pixels=None):
    del img  # faithful to PyTorch: forward(img) ignores img
    H = W = img_size
    assert H >= 2 and W >= 2, "img_size must be >= 2 (linspace(-1,1,n) scaling)"
    F_frames = latents.shape[0]
    dim_hidden = params["b0"].shape[0]
    f32 = jnp.float32

    # Hoisted, pixel-independent work (tiny one-off XLA ops in the wrapper):
    # modulator + final-layer weight folded into C; b1 folded into C's last
    # column; w0_initial folded into the layer-0 scalars.
    mods = jax.nn.relu(latents.astype(f32) @ params["wm"].astype(f32).T
                       + params["bm"].astype(f32))                       # (F, dh)
    c = mods * params["w1"].astype(f32)[None, :]                         # (F, dh)
    b1col = jnp.broadcast_to(params["b1"].astype(f32).reshape(1, 1), (F_frames, 1))
    c_flat = jnp.concatenate([c, b1col], axis=1).reshape(-1)             # (F*(dh+1),)
    w0b_flat = (jnp.concatenate(
        [params["w0"].astype(f32), params["b0"].astype(f32)[:, None]], axis=1)
        * W0_INITIAL).reshape(-1)                                        # (3*dh,)

    if max_tile_pixels is None:
        max_tile_pixels = _derive_max_tile_pixels(F_frames)
    rows = _pick_rows_per_tile(H, W, max_tile_pixels)
    grid = (H // rows,)

    kernel = functools.partial(_multi_siren_kernel, H, W, rows, F_frames, dim_hidden)
    smem = pl.BlockSpec(memory_space=pltpu.MemorySpace.SMEM)

    out = pl.pallas_call(
        kernel,
        out_shape=jax.ShapeDtypeStruct((F_frames, H, W), f32),
        grid=grid,
        in_specs=[smem, smem],
        out_specs=pl.BlockSpec((F_frames, rows, W), lambda i: (0, i, 0)),
        compiler_params=pltpu.CompilerParams(
            dimension_semantics=("parallel",),
            vmem_limit_bytes=32 * 1024 * 1024),
    )(w0b_flat, c_flat)

    # Module contract is (1, H, W, nframes); this permute is a small XLA
    # epilogue (lane-narrow, counted in the roofline but required by the spec).
    return jnp.transpose(out, (1, 2, 0))[None, ...]


def multi_siren_reference(params, latents, img_size):
    H = W = img_size
    t = jnp.linspace(-1.0, 1.0, img_size, dtype=jnp.float32)
    gy, gx = jnp.meshgrid(t, t, indexing="ij")
    coords = jnp.stack([gy, gx], axis=-1).reshape(H * W, 2)
    mods = jax.nn.relu(latents @ params["wm"].T + params["bm"])            # (F, dh)
    h = jnp.sin(W0_INITIAL * (coords @ params["w0"].T + params["b0"]))     # (N, dh)
    outs = jnp.einsum("nd,fd,d->fn", h, mods, params["w1"]) + params["b1"][0]
    outs = outs.reshape(latents.shape[0], H, W)
    return jnp.transpose(outs, (1, 2, 0))[None, ...]


def init_params(key, img_size, nframes, n_latent, dim_hidden=3):
    ks = jax.random.split(key, 8)
    # Siren layer 0 (is_first): uniform(-1/dim_in, 1/dim_in), dim_in=2
    w_std0 = 1.0 / 2.0
    w0 = jax.random.uniform(ks[0], (dim_hidden, 2), jnp.float32, -w_std0, w_std0)
    b0 = jax.random.uniform(ks[1], (dim_hidden,), jnp.float32, -w_std0, w_std0)
    # Siren last layer: uniform(-sqrt(6/dh)/w0, ...) with w0=1
    w_std1 = math.sqrt(6.0 / dim_hidden) / 1.0
    w1 = jax.random.uniform(ks[2], (dim_hidden,), jnp.float32, -w_std1, w_std1)
    b1 = jax.random.uniform(ks[3], (1,), jnp.float32, -w_std1, w_std1)
    # Modulator Linear(n_latent -> dim_hidden), torch default-ish uniform init
    lim = 1.0 / math.sqrt(n_latent)
    wm = jax.random.uniform(ks[4], (dim_hidden, n_latent), jnp.float32, -lim, lim)
    bm = jax.random.uniform(ks[5], (dim_hidden,), jnp.float32, -lim, lim)
    # latents ~ N(0, 0.01)
    latents = 0.01 * jax.random.normal(ks[6], (nframes, n_latent), jnp.float32)
    params = dict(w0=w0, b0=b0, w1=w1, b1=b1, wm=wm, bm=bm)
    return params, latents


if __name__ == "__main__":
    img_size, nframes, n_latent = 16, 8, 2
    key = jax.random.PRNGKey(0)
    params, latents = init_params(key, img_size, nframes, n_latent)

    # img is accepted (and ignored) exactly like the PyTorch module's forward.
    img = jax.random.normal(jax.random.PRNGKey(1), (1, img_size, img_size, nframes),
                            jnp.float32)

    out = multi_siren_forward(img, params, latents, img_size)
    out = jax.block_until_ready(out)

    ref = multi_siren_reference(params, latents, img_size)
    assert out.shape == (1, img_size, img_size, nframes)
    np.testing.assert_allclose(np.asarray(out), np.asarray(ref), rtol=1e-5, atol=3e-5)
    print("KERNEL_OK")
</pallas_src>

<mosaic_0001>
module attributes {stable_mosaic.version = 11 : i64} {
  func.func @_multi_siren_kernel(%arg0: i32, %arg1: memref<9xf32, #tpu.memory_space<smem>>, %arg2: memref<32xf32, #tpu.memory_space<smem>>, %arg3: memref<8x8x16xf32, #tpu.memory_space<vmem>>) attributes {dimension_semantics = [#tpu.dimension_semantics<parallel>], iteration_bounds = array<i64: 2>, scalar_prefetch = 0 : i64, scratch_operands = 0 : i64, tpu.core_type = #tpu.core_type<tc>, window_params = [{transform_indices = @transform_0, window_bounds = array<i64: 9>}, {transform_indices = @transform_1, window_bounds = array<i64: 32>}, {transform_indices = @transform_2, window_bounds = array<i64: 8, 8, 16>}]} {
    %0 = tpu.iota {dimensions = array<i32: 0>} : vector<8x16xi32>
    %1 = arith.sitofp %0 : vector<8x16xi32> to vector<8x16xf32>
    %2 = tpu.iota {dimensions = array<i32: 1>} : vector<8x16xi32>
    %3 = arith.sitofp %2 : vector<8x16xi32> to vector<8x16xf32>
    %c8_i32 = arith.constant 8 : i32
    %4 = arith.muli %arg0, %c8_i32 : i32
    %5 = arith.sitofp %4 : i32 to f32
    %6 = vector.broadcast %5 : f32 to vector<8x16xf32>
    %7 = arith.addf %1, %6 : vector<8x16xf32>
    %cst = arith.constant 0.13333334 : f32
    %8 = vector.broadcast %cst : f32 to vector<8x16xf32>
    %9 = arith.mulf %7, %8 : vector<8x16xf32>
    %cst_0 = arith.constant 1.000000e+00 : f32
    %10 = vector.broadcast %cst_0 : f32 to vector<8x16xf32>
    %11 = arith.subf %9, %10 : vector<8x16xf32>
    %cst_1 = arith.constant 0.13333334 : f32
    %12 = vector.broadcast %cst_1 : f32 to vector<8x16xf32>
    %13 = arith.mulf %3, %12 : vector<8x16xf32>
    %cst_2 = arith.constant 1.000000e+00 : f32
    %14 = vector.broadcast %cst_2 : f32 to vector<8x16xf32>
    %15 = arith.subf %13, %14 : vector<8x16xf32>
    %c0 = arith.constant 0 : index
    %16 = memref.load %arg1[%c0] : memref<9xf32, #tpu.memory_space<smem>>
    %17 = vector.broadcast %16 : f32 to vector<8x16xf32>
    %18 = arith.mulf %17, %11 : vector<8x16xf32>
    %c1 = arith.constant 1 : index
    %19 = memref.load %arg1[%c1] : memref<9xf32, #tpu.memory_space<smem>>
    %20 = vector.broadcast %19 : f32 to vector<8x16xf32>
    %21 = arith.mulf %20, %15 : vector<8x16xf32>
    %22 = arith.addf %18, %21 : vector<8x16xf32>
    %c2 = arith.constant 2 : index
    %23 = memref.load %arg1[%c2] : memref<9xf32, #tpu.memory_space<smem>>
    %24 = vector.broadcast %23 : f32 to vector<8x16xf32>
    %25 = arith.addf %22, %24 : vector<8x16xf32>
    %26 = math.sin %25 : vector<8x16xf32>
    %c3 = arith.constant 3 : index
    %27 = memref.load %arg1[%c3] : memref<9xf32, #tpu.memory_space<smem>>
    %28 = vector.broadcast %27 : f32 to vector<8x16xf32>
    %29 = arith.mulf %28, %11 : vector<8x16xf32>
    %c4 = arith.constant 4 : index
    %30 = memref.load %arg1[%c4] : memref<9xf32, #tpu.memory_space<smem>>
    %31 = vector.broadcast %30 : f32 to vector<8x16xf32>
    %32 = arith.mulf %31, %15 : vector<8x16xf32>
    %33 = arith.addf %29, %32 : vector<8x16xf32>
    %c5 = arith.constant 5 : index
    %34 = memref.load %arg1[%c5] : memref<9xf32, #tpu.memory_space<smem>>
    %35 = vector.broadcast %34 : f32 to vector<8x16xf32>
    %36 = arith.addf %33, %35 : vector<8x16xf32>
    %37 = math.sin %36 : vector<8x16xf32>
    %c6 = arith.constant 6 : index
    %38 = memref.load %arg1[%c6] : memref<9xf32, #tpu.memory_space<smem>>
    %39 = vector.broadcast %38 : f32 to vector<8x16xf32>
    %40 = arith.mulf %39, %11 : vector<8x16xf32>
    %c7 = arith.constant 7 : index
    %41 = memref.load %arg1[%c7] : memref<9xf32, #tpu.memory_space<smem>>
    %42 = vector.broadcast %41 : f32 to vector<8x16xf32>
    %43 = arith.mulf %42, %15 : vector<8x16xf32>
    %44 = arith.addf %40, %43 : vector<8x16xf32>
    %c8 = arith.constant 8 : index
    %45 = memref.load %arg1[%c8] : memref<9xf32, #tpu.memory_space<smem>>
    %46 = vector.broadcast %45 : f32 to vector<8x16xf32>
    %47 = arith.addf %44, %46 : vector<8x16xf32>
    %48 = math.sin %47 : vector<8x16xf32>
    %c0_3 = arith.constant 0 : index
    %49 = memref.load %arg2[%c0_3] : memref<32xf32, #tpu.memory_space<smem>>
    %50 = vector.broadcast %49 : f32 to vector<8x16xf32>
    %51 = arith.mulf %26, %50 : vector<8x16xf32>
    %c3_4 = arith.constant 3 : index
    %52 = memref.load %arg2[%c3_4] : memref<32xf32, #tpu.memory_space<smem>>
    %53 = vector.broadcast %52 : f32 to vector<8x16xf32>
    %54 = arith.addf %51, %53 : vector<8x16xf32>
    %c1_5 = arith.constant 1 : index
    %55 = memref.load %arg2[%c1_5] : memref<32xf32, #tpu.memory_space<smem>>
    %56 = vector.broadcast %55 : f32 to vector<8x16xf32>
    %57 = arith.mulf %37, %56 : vector<8x16xf32>
    %58 = arith.addf %54, %57 : vector<8x16xf32>
    %c2_6 = arith.constant 2 : index
    %59 = memref.load %arg2[%c2_6] : memref<32xf32, #tpu.memory_space<smem>>
    %60 = vector.broadcast %59 : f32 to vector<8x16xf32>
    %61 = arith.mulf %48, %60 : vector<8x16xf32>
    %62 = arith.addf %58, %61 : vector<8x16xf32>
    %c0_7 = arith.constant 0 : index
    %c0_8 = arith.constant 0 : index
    %c0_9 = arith.constant 0 : index
    %63 = vector.load %arg3[%c0_7, %c0_8, %c0_9] : memref<8x8x16xf32, #tpu.memory_space<vmem>>, vector<1x8x16xf32>
    %64 = vector.shape_cast %63 : vector<1x8x16xf32> to vector<8x16xf32>
    %65 = vector.shape_cast %62 : vector<8x16xf32> to vector<1x8x16xf32>
    tpu.vector_store %arg3[%c0_7, %c0_8, %c0_9], %65 {strides = array<i32>} : memref<8x8x16xf32, #tpu.memory_space<vmem>>, vector<1x8x16xf32>,
    %c4_10 = arith.constant 4 : index
    %66 = memref.load %arg2[%c4_10] : memref<32xf32, #tpu.memory_space<smem>>
    %67 = vector.broadcast %66 : f32 to vector<8x16xf32>
    %68 = arith.mulf %26, %67 : vector<8x16xf32>
    %c7_11 = arith.constant 7 : index
    %69 = memref.load %arg2[%c7_11] : memref<32xf32, #tpu.memory_space<smem>>
    %70 = vector.broadcast %69 : f32 to vector<8x16xf32>
    %71 = arith.addf %68, %70 : vector<8x16xf32>
    %c5_12 = arith.constant 5 : index
    %72 = memref.load %arg2[%c5_12] : memref<32xf32, #tpu.memory_space<smem>>
    %73 = vector.broadcast %72 : f32 to vector<8x16xf32>
    %74 = arith.mulf %37, %73 : vector<8x16xf32>
    %75 = arith.addf %71, %74 : vector<8x16xf32>
    %c6_13 = arith.constant 6 : index
    %76 = memref.load %arg2[%c6_13] : memref<32xf32, #tpu.memory_space<smem>>
    %77 = vector.broadcast %76 : f32 to vector<8x16xf32>
    %78 = arith.mulf %48, %77 : vector<8x16xf32>
    %79 = arith.addf %75, %78 : vector<8x16xf32>
    %c1_14 = arith.constant 1 : index
    %c0_15 = arith.constant 0 : index
    %c0_16 = arith.constant 0 : index
    %80 = vector.load %arg3[%c1_14, %c0_15, %c0_16] : memref<8x8x16xf32, #tpu.memory_space<vmem>>, vector<1x8x16xf32>
    %81 = vector.shape_cast %80 : vector<1x8x16xf32> to vector<8x16xf32>
    %82 = vector.shape_cast %79 : vector<8x16xf32> to vector<1x8x16xf32>
    tpu.vector_store %arg3[%c1_14, %c0_15, %c0_16], %82 {strides = array<i32>} : memref<8x8x16xf32, #tpu.memory_space<vmem>>, vector<1x8x16xf32>,
    %c8_17 = arith.constant 8 : index
    %83 = memref.load %arg2[%c8_17] : memref<32xf32, #tpu.memory_space<smem>>
    %84 = vector.broadcast %83 : f32 to vector<8x16xf32>
    %85 = arith.mulf %26, %84 : vector<8x16xf32>
    %c11 = arith.constant 11 : index
    %86 = memref.load %arg2[%c11] : memref<32xf32, #tpu.memory_space<smem>>
    %87 = vector.broadcast %86 : f32 to vector<8x16xf32>
    %88 = arith.addf %85, %87 : vector<8x16xf32>
    %c9 = arith.constant 9 : index
    %89 = memref.load %arg2[%c9] : memref<32xf32, #tpu.memory_space<smem>>
    %90 = vector.broadcast %89 : f32 to vector<8x16xf32>
    %91 = arith.mulf %37, %90 : vector<8x16xf32>
    %92 = arith.addf %88, %91 : vector<8x16xf32>
    %c10 = arith.constant 10 : index
    %93 = memref.load %arg2[%c10] : memref<32xf32, #tpu.memory_space<smem>>
    %94 = vector.broadcast %93 : f32 to vector<8x16xf32>
    %95 = arith.mulf %48, %94 : vector<8x16xf32>
    %96 = arith.addf %92, %95 : vector<8x16xf32>
    %c2_18 = arith.constant 2 : index
    %c0_19 = arith.constant 0 : index
    %c0_20 = arith.constant 0 : index
    %97 = vector.load %arg3[%c2_18, %c0_19, %c0_20] : memref<8x8x16xf32, #tpu.memory_space<vmem>>, vector<1x8x16xf32>
    %98 = vector.shape_cast %97 : vector<1x8x16xf32> to vector<8x16xf32>
    %99 = vector.shape_cast %96 : vector<8x16xf32> to vector<1x8x16xf32>
    tpu.vector_store %arg3[%c2_18, %c0_19, %c0_20], %99 {strides = array<i32>} : memref<8x8x16xf32, #tpu.memory_space<vmem>>, vector<1x8x16xf32>,
    %c12 = arith.constant 12 : index
    %100 = memref.load %arg2[%c12] : memref<32xf32, #tpu.memory_space<smem>>
    %101 = vector.broadcast %100 : f32 to vector<8x16xf32>
    %102 = arith.mulf %26, %101 : vector<8x16xf32>
    %c15 = arith.constant 15 : index
    %103 = memref.load %arg2[%c15] : memref<32xf32, #tpu.memory_space<smem>>
    %104 = vector.broadcast %103 : f32 to vector<8x16xf32>
    %105 = arith.addf %102, %104 : vector<8x16xf32>
    %c13 = arith.constant 13 : index
    %106 = memref.load %arg2[%c13] : memref<32xf32, #tpu.memory_space<smem>>
    %107 = vector.broadcast %106 : f32 to vector<8x16xf32>
    %108 = arith.mulf %37, %107 : vector<8x16xf32>
    %109 = arith.addf %105, %108 : vector<8x16xf32>
    %c14 = arith.constant 14 : index
    %110 = memref.load %arg2[%c14] : memref<32xf32, #tpu.memory_space<smem>>
    %111 = vector.broadcast %110 : f32 to vector<8x16xf32>
    %112 = arith.mulf %48, %111 : vector<8x16xf32>
    %113 = arith.addf %109, %112 : vector<8x16xf32>
    %c3_21 = arith.constant 3 : index
    %c0_22 = arith.constant 0 : index
    %c0_23 = arith.constant 0 : index
    %114 = vector.load %arg3[%c3_21, %c0_22, %c0_23] : memref<8x8x16xf32, #tpu.memory_space<vmem>>, vector<1x8x16xf32>
    %115 = vector.shape_cast %114 : vector<1x8x16xf32> to vector<8x16xf32>
    %116 = vector.shape_cast %113 : vector<8x16xf32> to vector<1x8x16xf32>
    tpu.vector_store %arg3[%c3_21, %c0_22, %c0_23], %116 {strides = array<i32>} : memref<8x8x16xf32, #tpu.memory_space<vmem>>, vector<1x8x16xf32>,
    %c16 = arith.constant 16 : index
    %117 = memref.load %arg2[%c16] : memref<32xf32, #tpu.memory_space<smem>>
    %118 = vector.broadcast %117 : f32 to vector<8x16xf32>
    %119 = arith.mulf %26, %118 : vector<8x16xf32>
    %c19 = arith.constant 19 : index
    %120 = memref.load %arg2[%c19] : memref<32xf32, #tpu.memory_space<smem>>
    %121 = vector.broadcast %120 : f32 to vector<8x16xf32>
    %122 = arith.addf %119, %121 : vector<8x16xf32>
    %c17 = arith.constant 17 : index
    %123 = memref.load %arg2[%c17] : memref<32xf32, #tpu.memory_space<smem>>
    %124 = vector.broadcast %123 : f32 to vector<8x16xf32>
    %125 = arith.mulf %37, %124 : vector<8x16xf32>
    %126 = arith.addf %122, %125 : vector<8x16xf32>
    %c18 = arith.constant 18 : index
    %127 = memref.load %arg2[%c18] : memref<32xf32, #tpu.memory_space<smem>>
    %128 = vector.broadcast %127 : f32 to vector<8x16xf32>
    %129 = arith.mulf %48, %128 : vector<8x16xf32>
    %130 = arith.addf %126, %129 : vector<8x16xf32>
    %c4_24 = arith.constant 4 : index
    %c0_25 = arith.constant 0 : index
    %c0_26 = arith.constant 0 : index
    %131 = vector.load %arg3[%c4_24, %c0_25, %c0_26] : memref<8x8x16xf32, #tpu.memory_space<vmem>>, vector<1x8x16xf32>
    %132 = vector.shape_cast %131 : vector<1x8x16xf32> to vector<8x16xf32>
    %133 = vector.shape_cast %130 : vector<8x16xf32> to vector<1x8x16xf32>
    tpu.vector_store %arg3[%c4_24, %c0_25, %c0_26], %133 {strides = array<i32>} : memref<8x8x16xf32, #tpu.memory_space<vmem>>, vector<1x8x16xf32>,
    %c20 = arith.constant 20 : index
    %134 = memref.load %arg2[%c20] : memref<32xf32, #tpu.memory_space<smem>>
    %135 = vector.broadcast %134 : f32 to vector<8x16xf32>
    %136 = arith.mulf %26, %135 : vector<8x16xf32>
    %c23 = arith.constant 23 : index
    %137 = memref.load %arg2[%c23] : memref<32xf32, #tpu.memory_space<smem>>
    %138 = vector.broadcast %137 : f32 to vector<8x16xf32>
    %139 = arith.addf %136, %138 : vector<8x16xf32>
    %c21 = arith.constant 21 : index
    %140 = memref.load %arg2[%c21] : memref<32xf32, #tpu.memory_space<smem>>
    %141 = vector.broadcast %140 : f32 to vector<8x16xf32>
    %142 = arith.mulf %37, %141 : vector<8x16xf32>
    %143 = arith.addf %139, %142 : vector<8x16xf32>
    %c22 = arith.constant 22 : index
    %144 = memref.load %arg2[%c22] : memref<32xf32, #tpu.memory_space<smem>>
    %145 = vector.broadcast %144 : f32 to vector<8x16xf32>
    %146 = arith.mulf %48, %145 : vector<8x16xf32>
    %147 = arith.addf %143, %146 : vector<8x16xf32>
    %c5_27 = arith.constant 5 : index
    %c0_28 = arith.constant 0 : index
    %c0_29 = arith.constant 0 : index
    %148 = vector.load %arg3[%c5_27, %c0_28, %c0_29] : memref<8x8x16xf32, #tpu.memory_space<vmem>>, vector<1x8x16xf32>
    %149 = vector.shape_cast %148 : vector<1x8x16xf32> to vector<8x16xf32>
    %150 = vector.shape_cast %147 : vector<8x16xf32> to vector<1x8x16xf32>
    tpu.vector_store %arg3[%c5_27, %c0_28, %c0_29], %150 {strides = array<i32>} : memref<8x8x16xf32, #tpu.memory_space<vmem>>, vector<1x8x16xf32>,
    %c24 = arith.constant 24 : index
    %151 = memref.load %arg2[%c24] : memref<32xf32, #tpu.memory_space<smem>>
    %152 = vector.broadcast %151 : f32 to vector<8x16xf32>
    %153 = arith.mulf %26, %152 : vector<8x16xf32>
    %c27 = arith.constant 27 : index
    %154 = memref.load %arg2[%c27] : memref<32xf32, #tpu.memory_space<smem>>
    %155 = vector.broadcast %154 : f32 to vector<8x16xf32>
    %156 = arith.addf %153, %155 : vector<8x16xf32>
    %c25 = arith.constant 25 : index
    %157 = memref.load %arg2[%c25] : memref<32xf32, #tpu.memory_space<smem>>
    %158 = vector.broadcast %157 : f32 to vector<8x16xf32>
    %159 = arith.mulf %37, %158 : vector<8x16xf32>
    %160 = arith.addf %156, %159 : vector<8x16xf32>
    %c26 = arith.constant 26 : index
    %161 = memref.load %arg2[%c26] : memref<32xf32, #tpu.memory_space<smem>>
    %162 = vector.broadcast %161 : f32 to vector<8x16xf32>
    %163 = arith.mulf %48, %162 : vector<8x16xf32>
    %164 = arith.addf %160, %163 : vector<8x16xf32>
    %c6_30 = arith.constant 6 : index
    %c0_31 = arith.constant 0 : index
    %c0_32 = arith.constant 0 : index
    %165 = vector.load %arg3[%c6_30, %c0_31, %c0_32] : memref<8x8x16xf32, #tpu.memory_space<vmem>>, vector<1x8x16xf32>
    %166 = vector.shape_cast %165 : vector<1x8x16xf32> to vector<8x16xf32>
    %167 = vector.shape_cast %164 : vector<8x16xf32> to vector<1x8x16xf32>
    tpu.vector_store %arg3[%c6_30, %c0_31, %c0_32], %167 {strides = array<i32>} : memref<8x8x16xf32, #tpu.memory_space<vmem>>, vector<1x8x16xf32>,
    %c28 = arith.constant 28 : index
    %168 = memref.load %arg2[%c28] : memref<32xf32, #tpu.memory_space<smem>>
    %169 = vector.broadcast %168 : f32 to vector<8x16xf32>
    %170 = arith.mulf %26, %169 : vector<8x16xf32>
    %c31 = arith.constant 31 : index
    %171 = memref.load %arg2[%c31] : memref<32xf32, #tpu.memory_space<smem>>
    %172 = vector.broadcast %171 : f32 to vector<8x16xf32>
    %173 = arith.addf %170, %172 : vector<8x16xf32>
    %c29 = arith.constant 29 : index
    %174 = memref.load %arg2[%c29] : memref<32xf32, #tpu.memory_space<smem>>
    %175 = vector.broadcast %174 : f32 to vector<8x16xf32>
    %176 = arith.mulf %37, %175 : vector<8x16xf32>
    %177 = arith.addf %173, %176 : vector<8x16xf32>
    %c30 = arith.constant 30 : index
    %178 = memref.load %arg2[%c30] : memref<32xf32, #tpu.memory_space<smem>>
    %179 = vector.broadcast %178 : f32 to vector<8x16xf32>
    %180 = arith.mulf %48, %179 : vector<8x16xf32>
    %181 = arith.addf %177, %180 : vector<8x16xf32>
    %c7_33 = arith.constant 7 : index
    %c0_34 = arith.constant 0 : index
    %c0_35 = arith.constant 0 : index
    %182 = vector.load %arg3[%c7_33, %c0_34, %c0_35] : memref<8x8x16xf32, #tpu.memory_space<vmem>>, vector<1x8x16xf32>
    %183 = vector.shape_cast %182 : vector<1x8x16xf32> to vector<8x16xf32>
    %184 = vector.shape_cast %181 : vector<8x16xf32> to vector<1x8x16xf32>
    tpu.vector_store %arg3[%c7_33, %c0_34, %c0_35], %184 {strides = array<i32>} : memref<8x8x16xf32, #tpu.memory_space<vmem>>, vector<1x8x16xf32>,
    return
  }
  func.func @transform_0(%arg0: i32) -> i32 {
    %c0_i32 = arith.constant 0 : i32
    %c0_i32_0 = arith.constant 0 : i32
    return %c0_i32 : i32
  }
  func.func @transform_1(%arg0: i32) -> i32 {
    %c0_i32 = arith.constant 0 : i32
    %c0_i32_0 = arith.constant 0 : i32
    return %c0_i32 : i32
  }
  func.func @transform_2(%arg0: i32) -> (i32, i32, i32) {
    %c0_i32 = arith.constant 0 : i32
    %c0_i32_0 = arith.constant 0 : i32
    %c0_i32_1 = arith.constant 0 : i32
    return %c0_i32, %arg0, %c0_i32_0 : i32, i32, i32
  }
}

</mosaic_0001>

<bundles_post_ra>
// kernel: tpu_custom_call.1
= control target key start
LH: loop header
LB: loop body
LE: loop exit
PB: predicated region body
PF: predicated region fallthrough
CT: control target
= control target key end

     0   :  { %s1483_s0 = inlined_call_operand.hbm [shape: f32[9], index: 0, kind: input, shape index: {}]   ;;  %s1484_s1 = inlined_call_operand.vmem [shape: f32[32], index: 1, kind: input, shape index: {}]   ;;  %s1485_s2 = inlined_call_operand.hbm [shape: f32[8,16,16], index: 2, kind: output, shape index: {}]  }
   0x1   :  { %1491 = sst [smem:[#allocation16_spill]] %s1483_s0 }
   0x2   :  { %1492 = sst [smem:[#allocation17_spill]] %s1484_s1 }
   0x3   :  { %7 = vsyncpa [#allocation4], 0 }
   0x4   :  { %8 = vsyncpa [#allocation5], 0 }
   0x5   :  { %9 = vsyncpa [#allocation3], 0 }
   0x6   :  { %11 = vsyncpa [#allocation3 + $0x1], 0  ;;  %s1007_s9 = smov 0   ;;  %s1009_s10 = smov 0  }
   0x7   :  { %s1011_s11 = smov 0   ;;  %s1013_s12 = smov 0  }
   0x8 LB: > { %1493 = sst [smem:[#allocation11_spill]] %s966_s9  ;;  %s1028_s13 = sadd.s32 4294967295, %s978_s12   ;;  %s978_s12 = sphi %s1013_s12, %s1512_s12   ;;  %s974_s11 = sphi %s1011_s11, %s1514_s11   ;;  %s970_s10 = sphi %s1009_s10, %s1516_s10   ;;  %s966_s9 = sphi %s1007_s9, %s1515_s9  }
   0x9   : > { %1494 = sst [smem:[#allocation12_spill]] %s974_s11  ;;  %s718_s14 = sadd.s32 4294967294, %s978_s12  }
   0xa   : > { %s1032_s15 = sadd.s32 1, %s978_s12   ;;  %s66_s16 = sadd.s32 1, %s974_s11 }
   0xb   : > { %1495 = sst [smem:[#allocation13_spill]] %s1032_s15  ;;  %s63_s17 = ssub.s32 %s978_s12, %s1032_s15 }
   0xc   : > { %p76_p0 = scmp.ne.s32.totalorder %s974_s11, %s970_s10  ;;  %p64_p1 = scmp.eq.s32.totalorder %s63_s17, 0 }
   0xd   : > { %p77_p2 = scmp.eq.s32.totalorder %s1028_s13, 1  ;;  %p82_p3 = scmp.ne.s32.totalorder %s970_s10, %s966_s9 }
   0xe   : > { %p83_p4 = scmp.eq.s32.totalorder %s718_s14, 1  ;;  %p719_p7 = scmp.ge.s32.totalorder %s978_s12, 1 }
   0xf   : > { %s1043_s18 = scalar_select %p64_p1, %s974_s11, %s66_s16  }
  0x10   : > { %p1045_p5 = por %p77_p2, %p76_p0  ;;  %p1049_p6 = por %p83_p4, %p82_p3 }
  0x11   : > { %1496 = sst [smem:[#allocation14_spill]] %s1043_s18  ;;  %p90_p8 = scmp.lt.s32.totalorder %s978_s12, 3 }
  0x12   : > { %s1498_s20 = scalar_select %p1049_p6, 1, 0 }
  0x13   : > { %p1055_p9 = pnand %p719_p7, %p90_p8  ;;  %p824_p10 = scmp.eq.s32.totalorder %s1028_s13, 0 }
  0x14   : > { %1499 = sst [smem:[#allocation15_spill]] %s1498_s20  ;;  %s980_s26 = smov [#allocation2]  }
  0x15   : > { %p813_p11 = pneg %p1055_p9  ;;  %s1501_s1 = sld [smem:[#allocation17_spill]] }
  0x16   : > { %s1503_s0 = sld [smem:[#allocation16_spill]] }
  0x17   : > { %p1067_p12 = pnand %p824_p10, %p813_p11 }
  0x19   : > { %p897_p0 = pneg %p1067_p12 }
  0x1b   : > { %s112_s24 = sshll.u32 %s1501_s1, 4  ;;  %s113_s24 = int_to_ptr.vmem [resolvable:$true] %s112_s24 }
  0x1c   : > { %816 = dma.hbm_to_smem (!%p1067_p12), %s1503_s0, 16, %s980_s26, [#allocation4]  }
  0x1d   : > { %s895_s29 = scalar_lea.vmem %s113_s24, 16  ;;  %p903_p3 = scmp.lt.s32.totalorder %s113_s24, %s113_s24 }
  0x1e   : > { %p896_p13 = scmp.ne.s32.totalorder %s113_s24, %s895_s29  ;;  %p904_p4 = scmp.lt.s32.totalorder %s895_s29, %s895_s29 }
  0x20   : > { %p898_p1 = pnand %p897_p0, %p896_p13  ;;  %p905_p7 = por %p904_p4, %p903_p3 }
  0x22   : > { %p899_p2 = pneg %p898_p1 }
  0x24   : > { %p906_p8 = pnand %p905_p7, %p899_p2 }
  0x26   : > { %909 = shalt.err (!%p906_p8)
}
  0x27   : > { %s981_s30 = smov [#allocation6]   ;;  %125 = sbr.rel (%p1055_p9) target bundleno = 200 (0xc8), region = 28 }
  0x28   : > { %819 = dma.vmem_to_smem (!%p1067_p12), %s113_s24, 16, %s981_s30, [#allocation5]  }
  0x2c   : > { %953 = dma.done.wait (%p824_p10), [#allocation4], 16  }
  0x2d   : > { %955 = vsyncadd (%p824_p10), [#allocation4], 4294967280 }
  0x2e   : > { %957 = dma.done.wait (%p824_p10), [#allocation5], 16  }
  0x2f   : > { %959 = vsyncadd (%p824_p10), [#allocation5], 4294967280 }
  0x30   : > { %135 = sfence }
  0x31   : > { %v147_v0 = vlaneseq  ;;  %s726_s3 = sshll.u32 %s1028_s13, 3  ;;  %s161_s5 = sld [smem:[#allocation2]]  ;;  %v982_v58 = vmov 683565275   ;;  %v983_v60 = vmov 2475754826  }
  0x32   : > { %s154_s4 = scvt.s32.f32 %s726_s3  ;;  %s729_s6 = sld [smem:[#allocation2 + $0x1]]  ;;  %v984_v62 = vmov 2131351028  }
  0x33   : > { %v148_v1 = vshrl.u32 %v147_v0, 7  ;;  %v151_v2 = vand.u32 127, %v147_v0  ;;  %s730_s7 = sld [smem:[#allocation2 + $0x2]]  ;;  %v985_v0 = vmov 2102212464  }
  0x34   : > { %v155_v3 = vstv %s154_s4  ;;  %s735_s8 = sld [smem:[#allocation2 + $0x3]] }
  0x35   : > { %v149_v4 = vcvt.s32.f32 %v148_v1  ;;  %v152_v5 = vcvt.s32.f32 %v151_v2  ;;  %s736_s14 = sld [smem:[#allocation2 + $0x4]]  ;;  %v986_v2 = vmov 920167782  }
  0x36   : > { %s737_s16 = sld [smem:[#allocation2 + $0x5]] }
  0x37   : > { %v156_v6 = vadd.f32 %v155_v3, %v149_v4  ;;  %v159_v7 = vmul.f32 0.13333334, %v152_v5  ;;  %s742_s17 = sld [smem:[#allocation2 + $0x6]]  ;;  %v162_v10 = vstv %s161_s5 }
  0x38   : > { %v165_v11 = vstv %s729_s6  ;;  %s743_s21 = sld [smem:[#allocation2 + $0x7]] }
  0x39   : > { %v157_v8 = vmul.f32 0.13333334, %v156_v6  ;;  %v728_v9 = vadd.f32 -1.0, %v159_v7  ;;  %s744_s22 = sld [smem:[#allocation2 + $0x8]]  ;;  %v169_v18 = vstv %s730_s7 }
  0x3a   : > { %v276_v14 = vstv %s735_s8  ;;  %s1239_s23 = sld [smem:[#allocation6]] }
  0x3b   : > { %v727_v12 = vadd.f32 -1.0, %v157_v8  ;;  %v166_v13 = vmul.f32 %v728_v9, %v165_v11  ;;  %v279_v17 = vstv %s736_s14  ;;  %s1242_s24 = sld [smem:[#allocation6 + $0x3]] }
  0x3c   : > { %v280_v19 = vmul.f32 %v728_v9, %v279_v17  ;;  %v283_v21 = vstv %s737_s16  ;;  %s1252_s25 = sld [smem:[#allocation6 + $0x1]] }
  0x3d   : > { %v163_v15 = vmul.f32 %v727_v12, %v162_v10  ;;  %v277_v16 = vmul.f32 %v727_v12, %v276_v14  ;;  %v390_v22 = vstv %s742_s17  ;;  %v987_v10 = vmov 1326507024   ;;  %s1254_s26 = sld [smem:[#allocation6 + $0x2]] }
  0x3e   : > { %v393_v24 = vstv %s743_s21  ;;  %v391_v26 = vmul.f32 %v727_v12, %v390_v22  ;;  %s1256_s27 = sld [smem:[#allocation6 + $0x4]] }
  0x3f   : > { %v167_v20 = vadd.f32 %v166_v13, %v163_v15  ;;  %v281_v23 = vadd.f32 %v280_v19, %v277_v16  ;;  %v394_v27 = vmul.f32 %v728_v9, %v393_v24  ;;  %v397_v33 = vstv %s744_s22  ;;  %s1264_s28 = sld [smem:[#allocation6 + $0x7]] }
  0x40   : > { %s1266_s29 = sld [smem:[#allocation6 + $0x5]] }
  0x41   : > { %v1091_v25 = vadd.f32 %v169_v18, %v167_v20  ;;  %v1093_v28 = vadd.f32 %v283_v21, %v281_v23  ;;  %v395_v36 = vadd.f32 %v394_v27, %v391_v26  ;;  %s1269_s30 = sld [smem:[#allocation6 + $0x6]] }
  0x42   : > { %s1274_s3 = sld [smem:[#allocation6 + $0x8]] }
  0x43   : > { %v171_v29 = vand.u32 2147483647, %v1091_v25  ;;  %v174_v30 = vand.u32 2139095040, %v1091_v25  ;;  %v285_v31 = vand.u32 2147483647, %v1093_v28  ;;  %v288_v32 = vand.u32 2139095040, %v1093_v28 }
  0x44   : > { %v1103_v40 = vadd.f32 %v397_v33, %v395_v36  ;;  %s1276_s4 = sld [smem:[#allocation6 + $0xb]] }
  0x45   : > { %v175_v34 = vshrl.u32 %v174_v30, 23  ;;  %v178_v35 = vand.u32 8388607, %v171_v29  ;;  %v289_v37 = vshrl.u32 %v288_v32, 23  ;;  %v292_v38 = vand.u32 8388607, %v285_v31 }
  0x46   : > { %v402_v46 = vand.u32 2139095040, %v1103_v40  ;;  %v399_v56 = vand.u32 2147483647, %v1103_v40  ;;  %s1278_s5 = sld [smem:[#allocation6 + $0x9]] }
  0x47   : > { %v731_v39 = vadd.s32 4294967169, %v175_v34  ;;  %v738_v41 = vadd.s32 4294967169, %v289_v37  ;;  %v179_v42 = vor.u32 8388608, %v178_v35  ;;  %v293_v44 = vor.u32 8388608, %v292_v38  ;;  %s1280_s6 = sld [smem:[#allocation6 + $0xa]] }
  0x48   : > { %v403_v48 = vshrl.u32 %v402_v46, 23  ;;  %s1285_s7 = sld [smem:[#allocation6 + $0xc]] }
  0x49   : > { %v181_v43 = vadd.s32 1, %v731_v39  ;;  %v295_v45 = vadd.s32 1, %v738_v41  ;;  %v1106_v51 = vshll.u32 %v179_v42, 8  ;;  %v1110_v55 = vshll.u32 %v293_v44, 8  ;;  %s1287_s8 = sld [smem:[#allocation6 + $0xf]] }
  0x4a   : > { %v1118_v4 = vadd.s32 4294967169, %v403_v48  ;;  %s1289_s14 = sld [smem:[#allocation6 + $0xd]] }
  0x4b   : > { %vm182_vm0 = vcmp.gt.s32.totalorder %v181_v43, 0  ;;  %vm296_vm1 = vcmp.gt.s32.totalorder %v295_v45, 0  ;;  %s1293_s16 = sld [smem:[#allocation6 + $0xe]] }
  0x4c   : > { %v183_v47 = vsel %vm182_vm0, %v181_v43, 0  ;;  %v297_v52 = vsel %vm296_vm1, %v295_v45, 0  ;;  %s1295_s17 = sld [smem:[#allocation6 + $0x10]] }
  0x4d   : > { %v184_v49 = vshrl.u32 %v183_v47, 5  ;;  %v185_v50 = vand.u32 31, %v183_v47  ;;  %v1108_v53 = vshrl.u32 %v297_v52, 5  ;;  %v299_v54 = vand.u32 31, %v297_v52  ;;  %s1298_s21 = sld [smem:[#allocation6 + $0x13]] }
  0x4e   : > { %s1301_s22 = sld [smem:[#allocation6 + $0x11]] }
  0x4f   : > { %v186_v57 = vsub.s32 32, %v185_v50  ;;  %v188_v59 = vshll.u32 %v982_v58, %v185_v50  ;;  %v191_v61 = vshll.u32 %v983_v60, %v185_v50  ;;  %v194_v63 = vshll.u32 %v984_v62, %v185_v50  ;;  %s1304_s0 = sld [smem:[#allocation6 + $0x14]] }
  0x50   : > { %v197_v1 = vshll.u32 %v985_v0, %v185_v50  ;;  %v200_v3 = vshll.u32 %v986_v2, %v185_v50  ;;  %vm203_vm2 = vcmp.lt.s32.totalorder %v184_v49, 1  ;;  %vm204_vm3 = vcmp.lt.s32.totalorder %v184_v49, 2  ;;  %s1308_s1 = sld [smem:[#allocation6 + $0x17]] }
  0x51   : > { %v187_v5 = vshrl.u32 %v982_v58, %v186_v57  ;;  %v189_v6 = vshrl.u32 %v983_v60, %v186_v57  ;;  %v192_v7 = vshrl.u32 %v984_v62, %v186_v57  ;;  %v195_v8 = vshrl.u32 %v985_v0, %v186_v57  ;;  %s1320_s18 = sld [smem:[#allocation6 + $0x15]] }
  0x52   : > { %v198_v9 = vshrl.u32 %v986_v2, %v186_v57  ;;  %v201_v11 = vshrl.u32 %v987_v10, %v186_v57  ;;  %vm206_vm4 = vcmp.lt.s32.totalorder %v184_v49, 4  ;;  %v300_v15 = vsub.s32 32, %v299_v54  ;;  %s1325_s11 = sld [smem:[#allocation6 + $0x18]] }
  0x53   : > { %v190_v12 = vor.u32 %v189_v6, %v188_v59  ;;  %v193_v13 = vor.u32 %v192_v7, %v191_v61  ;;  %v196_v14 = vor.u32 %v195_v8, %v194_v63  ;;  %vm205_vm5 = vcmp.lt.s32.totalorder %v184_v49, 3  ;;  %s1331_s15 = sld [smem:[#allocation6 + $0x1c]] }
  0x54   : > { %v199_v16 = vor.u32 %v198_v9, %v197_v1  ;;  %v202_v17 = vor.u32 %v201_v11, %v200_v3  ;;  %v302_v18 = vshll.u32 %v982_v58, %v299_v54  ;;  %v305_v27 = vshll.u32 %v983_v60, %v299_v54  ;;  %s1344_s20 = sld [smem:[#allocation6 + $0x19]] }
  0x55   : > { %v207_v19 = vsel %vm203_vm2, %v187_v5, %v190_v12  ;;  %v208_v20 = vsel %vm206_vm4, %v196_v14, 2102212464  ;;  %v211_v21 = vsel %vm203_vm2, %v190_v12, %v193_v13  ;;  %v215_v22 = vsel %vm203_vm2, %v193_v13, %v196_v14  ;;  %s1347_s9 = sld [smem:[#allocation6 + $0x1f]] }
  0x56   : > { %v209_v23 = vsel %vm205_vm5, %v193_v13, %v208_v20  ;;  %v212_v24 = vsel %vm206_vm4, %v199_v16, 920167782  ;;  %v216_v26 = vsel %vm206_vm4, %v202_v17, 1326507024  ;;  %v301_v33 = vshrl.u32 %v982_v58, %v300_v15 }
  0x57   : > { %v213_v30 = vsel %vm205_vm5, %v196_v14, %v212_v24  ;;  %v217_v32 = vsel %vm205_vm5, %v199_v16, %v216_v26  ;;  %v303_v34 = vshrl.u32 %v983_v60, %v300_v15  ;;  %v210_v35 = vsel %vm204_vm3, %v207_v19, %v209_v23 }
  0x58   : > { %v214_v36 = vsel %vm204_vm3, %v211_v21, %v213_v30  ;;  %v218_v37 = vsel %vm204_vm3, %v215_v22, %v217_v32  ;;  %v306_v38 = vshrl.u32 %v984_v62, %v300_v15  ;;  %v308_v46 = vshll.u32 %v984_v62, %v299_v54 }
  0x59   : > { %v1138_v39 = vmul.u32.u64.low %v1106_v51, %v218_v37  ;;  %v1139_v41 = vmul.u32.u64.high %v1106_v51, %v218_v37, %v1138_v39  ;;  %v1142_v42 = vmul.u32.u64.low %v1106_v51, %v214_v36  ;;  %v1143_v43 = vmul.u32.u64.high %v1106_v51, %v214_v36, %v1142_v42 }
  0x5a   : > { %v304_v44 = vor.u32 %v303_v34, %v302_v18  ;;  %v307_v45 = vor.u32 %v306_v38, %v305_v27  ;;  %v309_v47 = vshrl.u32 %v985_v0, %v300_v15  ;;  %v311_v48 = vshll.u32 %v985_v0, %v299_v54 }
  0x5b   : > { %v312_v49 = vshrl.u32 %v986_v2, %v300_v15  ;;  %v314_v50 = vshll.u32 %v986_v2, %v299_v54  ;;  %v315_v52 = vshrl.u32 %v987_v10, %v300_v15  ;;  %v226_v57 = vmul.u32 %v1106_v51, %v210_v35 }
  0x5c   : > { %v310_v59 = vor.u32 %v309_v47, %v308_v46  ;;  %vm317_vm6 = vcmp.lt.s32.totalorder %v1108_v53, 1  ;;  %vm318_vm7 = vcmp.lt.s32.totalorder %v1108_v53, 2  ;;  %vm228_vm8 = vc.u32 %v1139_v41, %v1142_v42 }
  0x5d   : > { %v229_v61 = vadd.s32 1, %v1143_v43  ;;  %v313_v63 = vor.u32 %v312_v49, %v311_v48  ;;  %vm319_vm9 = vcmp.lt.s32.totalorder %v1108_v53, 3  ;;  %v316_v1 = vor.u32 %v315_v52, %v314_v50 }
  0x5e   : > { %vm320_vm10 = vcmp.lt.s32.totalorder %v1108_v53, 4  ;;  %v321_v54 = vsel %vm317_vm6, %v301_v33, %v304_v44  ;;  %v325_v3 = vsel %vm317_vm6, %v304_v44, %v307_v45  ;;  %v329_v7 = vsel %vm317_vm6, %v307_v45, %v310_v59 }
  0x5f   : > { %v230_v51 = vsel %vm228_vm8, %v229_v61, %v1143_v43  ;;  %v322_v5 = vsel %vm320_vm10, %v310_v59, 2102212464  ;;  %v326_v6 = vsel %vm320_vm10, %v313_v63, 920167782  ;;  %v330_v12 = vsel %vm320_vm10, %v316_v1, 1326507024 }
  0x60   : > { %v231_v8 = vadd.s32 %v230_v51, %v226_v57  ;;  %v323_v9 = vsel %vm319_vm9, %v307_v45, %v322_v5  ;;  %v327_v11 = vsel %vm319_vm9, %v310_v59, %v326_v6  ;;  %v331_v15 = vsel %vm319_vm9, %v313_v63, %v330_v12 }
  0x61   : > { %v324_v13 = vsel %vm318_vm7, %v321_v54, %v323_v9  ;;  %v328_v14 = vsel %vm318_vm7, %v325_v3, %v327_v11  ;;  %v409_v16 = vadd.s32 1, %v1118_v4  ;;  %v332_v18 = vsel %vm318_vm7, %v329_v7, %v331_v15 }
  0x62   : > { %v232_v17 = vadd.s32 536870912, %v231_v8  ;;  %v1169_v19 = vmul.u32.u64.low %v1110_v55, %v328_v14  ;;  %v1170_v20 = vmul.u32.u64.high %v1110_v55, %v328_v14, %v1169_v19  ;;  %v340_v26 = vmul.u32 %v1110_v55, %v324_v13 }
  0x63   : > { %v1174_v21 = vmul.u32.u64.low %v1110_v55, %v332_v18  ;;  %v1175_v22 = vmul.u32.u64.high %v1110_v55, %v332_v18, %v1174_v21  ;;  %vm410_vm11 = vcmp.gt.s32.totalorder %v409_v16, 0  ;;  %v406_v30 = vand.u32 8388607, %v399_v56 }
  0x64   : > { %v1177_v23 = vshrl.u32 %v232_v17, 30  ;;  %v411_v24 = vsel %vm410_vm11, %v409_v16, 0  ;;  %v343_v53 = vadd.s32 1, %v1170_v20  ;;  %vm173_vm4 = vcmp.lt.s32.totalorder %v1091_v25, 0 }
  0x65   : > { %v413_v4 = vand.u32 31, %v411_v24  ;;  %vm342_vm12 = vc.u32 %v1175_v22, %v1169_v19  ;;  %v407_v37 = vor.u32 8388608, %v406_v30  ;;  %v412_v38 = vshrl.u32 %v411_v24, 5 }
  0x66   : > { %v234_v27 = vshll.u32 %v1177_v23, 30  ;;  %v344_v34 = vsel %vm342_vm12, %v343_v53, %v1170_v20  ;;  %vm1229_vm5 = vcmp.le.f32.partialorder %v171_v29, 0.7853982  ;;  %vm287_vm6 = vcmp.lt.s32.totalorder %v1093_v28, 0 }
  0x67   : > { %v414_v32 = vsub.s32 32, %v413_v4  ;;  %v345_v35 = vadd.s32 %v344_v34, %v340_v26  ;;  %v416_v55 = vshll.u32 %v982_v58, %v413_v4  ;;  %v419_v44 = vshll.u32 %v983_v60, %v413_v4 }
  0x68   : > { %v235_v33 = vsub.s32 %v231_v8, %v234_v27  ;;  %v422_v47 = vshll.u32 %v984_v62, %v413_v4  ;;  %v425_v49 = vshll.u32 %v985_v0, %v413_v4  ;;  %v428_v57 = vshll.u32 %v986_v2, %v413_v4 }
  0x69   : > { %v346_v39 = vadd.s32 536870912, %v345_v35  ;;  %v417_v43 = vshrl.u32 %v983_v60, %v414_v32  ;;  %v420_v45 = vshrl.u32 %v984_v62, %v414_v32  ;;  %v423_v48 = vshrl.u32 %v985_v0, %v414_v32 }
  0x6a   : > { %v237_v36 = vsub.s32 0, %v235_v33  ;;  %v426_v52 = vshrl.u32 %v986_v2, %v414_v32  ;;  %v429_v59 = vshrl.u32 %v987_v10, %v414_v32  ;;  %v227_v60 = vadd.s32 %v1142_v42, %v1139_v41 }
  0x6b   : > { %v1194_v50 = vshrl.u32 %v346_v39, 30  ;;  %v415_v62 = vshrl.u32 %v982_v58, %v414_v32  ;;  %v447_v1 = vshll.u32 %v407_v37, 8  ;;  %v418_v3 = vor.u32 %v417_v43, %v416_v55 }
  0x6c   : > { %v732_v46 = vmin.u32 %v237_v36, %v235_v33  ;;  %v421_v0 = vor.u32 %v420_v45, %v419_v44  ;;  %v424_v51 = vor.u32 %v423_v48, %v422_v47  ;;  %v427_v6 = vor.u32 %v426_v52, %v425_v49 }
  0x6d   : > { %v348_v63 = vshll.u32 %v1194_v50, 30  ;;  %v430_v7 = vor.u32 %v429_v59, %v428_v57  ;;  %vm434_vm13 = vcmp.lt.s32.totalorder %v412_v38, 4  ;;  %vm431_vm15 = vcmp.lt.s32.totalorder %v412_v38, 1 }
  0x6e   : > { %v239_v61 = vclz %v732_v46  ;;  %vm432_vm0 = vcmp.lt.s32.totalorder %v412_v38, 2  ;;  %v436_v2 = vsel %vm434_vm13, %v424_v51, 2102212464  ;;  %vm433_vm1 = vcmp.lt.s32.totalorder %v412_v38, 3 }
  0x6f   : > { %v349_v5 = vsub.s32 %v345_v35, %v348_v63  ;;  %v435_v42 = vsel %vm431_vm15, %v415_v62, %v418_v3  ;;  %v437_v11 = vsel %vm433_vm1, %v421_v0, %v436_v2  ;;  %v439_v13 = vsel %vm431_vm15, %v418_v3, %v421_v0 }
  0x70   : > { %v733_v54 = vadd.s32 4294967294, %v239_v61  ;;  %v440_v14 = vsel %vm434_vm13, %v427_v6, 920167782  ;;  %v443_v15 = vsel %vm431_vm15, %v421_v0, %v424_v51  ;;  %v444_v20 = vsel %vm434_vm13, %v430_v7, 1326507024 }
  0x71   : > { %v351_v41 = vsub.s32 0, %v349_v5  ;;  %v441_v18 = vsel %vm433_vm1, %v424_v51, %v440_v14  ;;  %v438_v24 = vsel %vm432_vm0, %v435_v42, %v437_v11  ;;  %v445_v53 = vsel %vm433_vm1, %v427_v6, %v444_v20 }
  0x72   : > { %vm734_vm14 = vcmp.lt.s32.totalorder %v733_v54, 0  ;;  %v442_v27 = vsel %vm432_vm0, %v439_v13, %v441_v18  ;;  %v446_v32 = vsel %vm432_vm0, %v443_v15, %v445_v53  ;;  %v341_v39 = vadd.s32 %v1169_v19, %v1175_v22 }
  0x73   : > { %v242_v10 = vsel %vm734_vm14, 0, %v733_v54  ;;  %v739_v12 = vmin.u32 %v351_v41, %v349_v5  ;;  %v1215_v36 = vmul.u32.u64.low %v447_v1, %v446_v32  ;;  %v1216_v37 = vmul.u32.u64.high %v447_v1, %v446_v32, %v1215_v36 }
  0x74   : > { %v243_v8 = vsub.s32 32, %v242_v10  ;;  %v244_v58 = vshll.u32 %v235_v33, %v242_v10  ;;  %v247_v9 = vsub.s32 4294967266, %v242_v10  ;;  %v454_v45 = vmul.u32 %v447_v1, %v438_v24 }
  0x75   : > { %v353_v21 = vclz %v739_v12  ;;  %v1212_v33 = vmul.u32.u64.low %v447_v1, %v442_v27  ;;  %v1213_v34 = vmul.u32.u64.high %v447_v1, %v442_v27, %v1212_v33  ;;  %v257_v29 = vsub.s32 4, %v1177_v23 }
  0x76   : > { %v245_v16 = vshrl.u32 %v227_v60, %v243_v8  ;;  %v248_v17 = vadd.s32 127, %v247_v9  ;;  %vm1246_vm7 = vcmp.le.f32.partialorder %v285_v31, 0.7853982  ;;  %v371_v15 = vsub.s32 4, %v1194_v50 }
  0x77   : > { %v740_v30 = vadd.s32 4294967294, %v353_v21  ;;  %v457_v38 = vadd.s32 1, %v1213_v34  ;;  %vm456_vm3 = vc.u32 %v1216_v37, %v1212_v33  ;;  %v258_v11 = vsel %vm173_vm4, %v257_v29, %v1177_v23 }
  0x78   : > { %v246_v26 = vor.u32 %v245_v16, %v244_v58  ;;  %v249_v4 = vshll.u32 %v248_v17, 23  ;;  %v455_v13 = vadd.s32 %v1212_v33, %v1216_v37  ;;  %v260_v14 = vsel %vm1229_vm5, 0, %v258_v11 }
  0x79   : > { %vm741_vm2 = vcmp.lt.s32.totalorder %v740_v30, 0  ;;  %v458_v59 = vsel %vm456_vm3, %v457_v38, %v1213_v34  ;;  %v264_v24 = vadd.s32 3, %v260_v14  ;;  %vm263_vm9 = vweird.f32 %v1091_v25 }
  0x7a   : > { %v250_v35 = vor.u32 4788187, %v249_v4  ;;  %v253_v55 = vcvt.s32.f32 %v246_v26  ;;  %v356_v44 = vsel %vm741_vm2, 0, %v740_v30  ;;  %v459_v61 = vadd.s32 %v458_v59, %v454_v45 }
  0x7b   : > { %v357_v46 = vsub.s32 32, %v356_v44  ;;  %v358_v47 = vshll.u32 %v349_v5, %v356_v44  ;;  %v361_v48 = vsub.s32 4294967266, %v356_v44  ;;  %v372_v26 = vsel %vm287_vm6, %v371_v15, %v1194_v50 }
  0x7c   : > { %v251_v43 = vand.u32 2147483647, %v250_v35  ;;  %v460_v19 = vadd.s32 536870912, %v459_v61  ;;  %v374_v30 = vsel %vm1246_vm7, 0, %v372_v26  ;;  %v265_v35 = vand.u32 3, %v264_v24 }
  0x7d   : > { %v359_v52 = vshrl.u32 %v341_v39, %v357_v46  ;;  %v362_v57 = vadd.s32 127, %v361_v48  ;;  %v378_v37 = vadd.s32 3, %v374_v30  ;;  %vm401_vm12 = vcmp.lt.s32.totalorder %v1103_v40, 0 }
  0x7e   : > { %v254_v49 = vmul.f32 %v253_v55, %v251_v43  ;;  %v1224_v1 = vshrl.u32 %v460_v19, 30  ;;  %v504_v55 = vstv %s1239_s23  ;;  %vm267_vm10 = vcmp.eq.s32.totalorder %v265_v35, 0 }
  0x7f   : > { %v360_v60 = vor.u32 %v359_v52, %v358_v47  ;;  %v363_v63 = vshll.u32 %v362_v57, 23  ;;  %vm270_vm11 = vcmp.eq.s32.totalorder %v265_v35, 2  ;;  %v507_v45 = vstv %s1242_s24 }
  0x80   : > { %v255_v22 = vxor.u32 2147483648, %v254_v49  ;;  %v462_v0 = vshll.u32 %v1224_v1, 30  ;;  %v485_v36 = vsub.s32 4, %v1224_v1  ;;  %vm1312_vm13 = vcmp.le.f32.partialorder %v399_v56, 0.7853982 }
  0x81   : > { %v364_v62 = vor.u32 4788187, %v363_v63  ;;  %v367_v54 = vcvt.s32.f32 %v360_v60  ;;  %v379_v57 = vand.u32 3, %v378_v37  ;;  %v514_v59 = vstv %s1254_s26 }
  0x82   : > { %v256_v5 = vsel %vm173_vm4, %v255_v22, %v254_v49  ;;  %v463_v7 = vsub.s32 %v459_v61, %v462_v0  ;;  %v486_v38 = vsel %vm401_vm12, %v485_v36, %v1224_v1  ;;  %v510_v49 = vstv %s1252_s25 }
  0x83   : > { %v365_v3 = vand.u32 2147483647, %v364_v62  ;;  %v259_v10 = vsel %vm1229_vm5, %v1091_v25, %v256_v5  ;;  %v520_v61 = vstv %s1256_s27  ;;  %v523_v60 = vstv %s1264_s28  ;;  %s1341_s27 = sld [smem:[#allocation6 + $0x1b]]  ;;  %s988_s28 = smov [#allocation7]  }
  0x84   : > { %v465_v41 = vsub.s32 0, %v463_v7  ;;  %872 = vcosq.f32 %v259_v10  ;;  %vm266_vm14 = vcmp.lt.s32.totalorder %v265_v35, 2  ;;  %vm377_vm15 = vweird.f32 %v1093_v28 }
  0x85   : > { %v368_v6 = vmul.f32 %v367_v54, %v365_v3  ;;  %874 = vsinq.f32 %v259_v10  ;;  %v488_v62 = vsel %vm1312_vm13, 0, %v486_v38  ;;  %v526_v54 = vstv %s1266_s29  ;;  %s914_s29 = sshll.u32 %s988_s28, 4  ;;  %s915_s29 = int_to_ptr.vmem [resolvable:$false] %s914_s29 }
  0x86   : > { %v746_v42 = vmin.u32 %v465_v41, %v463_v7  ;;  %v530_v1 = vstv %s1269_s30  ;;  %v536_v51 = vstv %s1274_s3  ;;  %vm381_vm0 = vcmp.eq.s32.totalorder %v379_v57, 0  ;;  %s1352_s3 = sld [smem:[#allocation6 + $0x1d]]  ;;  %s916_s30 = scalar_lea.vmem %s915_s29, 2048 }
  0x87   : > { %v369_v2 = vxor.u32 2147483648, %v368_v6  ;;  %vm384_vm1 = vcmp.eq.s32.totalorder %v379_v57, 2  ;;  %v546_v10 = vstv %s1280_s6  ;;  %vm380_vm2 = vcmp.lt.s32.totalorder %v379_v57, 2 }
  0x88   : > { %v467_v9 = vclz %v746_v42  ;;  %v552_v41 = vstv %s1285_s7  ;;  %v555_v29 = vstv %s1287_s8  ;;  %v558_v42 = vstv %s1289_s14 }
  0x89   : > { %v370_v58 = vsel %vm287_vm6, %v369_v2, %v368_v6  ;;  %v492_v6 = vadd.s32 3, %v488_v62  ;;  %v542_v2 = vstv %s1278_s5  ;;  %v562_v11 = vstv %s1293_s16  ;;  %s1373_s5 = sld [smem:[#allocation6 + $0x16]] }
  0x8a   : > { %v373_v31 = vsel %vm1246_vm7, %v1093_v28, %v370_v58  ;;  %v747_v12 = vadd.s32 4294967294, %v467_v9  ;;  %v584_v14 = vstv %s1304_s0  ;;  %vm491_vm3 = vweird.f32 %v1103_v40  ;;  %s1376_s0 = sld [smem:[#allocation6 + $0x1a]] }
  0x8b   : > { %876 = vcosq.f32 %v373_v31  ;;  %v493_v15 = vand.u32 3, %v492_v6  ;;  %v603_v30 = vstv %s1341_s27  ;;  %v619_v35 = vstv %s1347_s9 }
  0x8c   : > { %vm748_vm8 = vcmp.lt.s32.totalorder %v747_v12, 0  ;;  %878 = vsinq.f32 %v373_v31  ;;  %v568_v31 = vstv %s1295_s17  ;;  %vm517_vm7 = vcmask 130048  }
  0x8d   : > { %v470_v23 = vsel %vm748_vm8, 0, %v747_v12  ;;  %v571_v12 = vstv %s1298_s21  ;;  %vm494_vm4 = vcmp.lt.s32.totalorder %v493_v15, 2  ;;  %vm495_vm5 = vcmp.eq.s32.totalorder %v493_v15, 0 }
  0x8e   : > { %v471_v16 = vsub.s32 32, %v470_v23  ;;  %v472_v17 = vshll.u32 %v463_v7, %v470_v23  ;;  %v475_v18 = vsub.s32 4294967266, %v470_v23  ;;  %v539_v7 = vstv %s1276_s4  ;;  %s1364_s4 = sld [smem:[#allocation6 + $0x12]] }
  0x8f   : > { %v587_v23 = vstv %s1308_s1  ;;  %s144_s1 = sand.u32 1, %s970_s10   ;;  %vm498_vm6 = vcmp.eq.s32.totalorder %v493_v15, 2 }
  0x90   : > { %v473_v20 = vshrl.u32 %v455_v13, %v471_v16  ;;  %v476_v21 = vadd.s32 127, %v475_v18  ;;  %v574_v13 = vstv %s1301_s22  ;;  %v600_v16 = vstv %s1325_s11  ;;  %s1381_s11 = sld [smem:[#allocation6 + $0x1e]]  ;;  %s1443_s25 = scalar_lea.sflag [#allocation3], %s144_s1 }
  0x91   : > { %v873_v53 = vpop.eup %872 }
  0x92   : > { %v474_v4 = vor.u32 %v473_v20, %v472_v17  ;;  %v477_v27 = vshll.u32 %v476_v21, 23  ;;  %v875_v34 = vpop.eup %874  ;;  %v271_v43 = vxor.u32 2147483648, %v873_v53  ;;  %v616_v17 = vstv %s1331_s15  ;;  %s725_s15 = sshll.u32 %s144_s1, 6 }
  0x93   : > { %v268_v39 = vxor.u32 2147483648, %v875_v34  ;;  %v590_v21 = vstv %s1320_s18  ;;  %s1404_s9 = scalar_lea.vmem [#allocation7], %s725_s15 }
  0x94   : > { %v478_v32 = vor.u32 4788187, %v477_v27  ;;  %v481_v33 = vcvt.s32.f32 %v474_v4  ;;  %v272_v63 = vsel %vm270_vm11, %v271_v43, %v875_v34  ;;  %s644_s18 = sshll.u32 %s1404_s9, 4  ;;  %s1418_s18 = int_to_ptr.vmem [resolvable:$true] %s644_s18 }
  0x95   : > { %v269_v56 = vsel %vm267_vm10, %v873_v53, %v268_v39  ;;  %s910_s26 = scalar_lea.vmem %s1418_s18, 1024  ;;  %p917_p12 = scmp.lt.s32.totalorder %s1418_s18, %s915_s29 }
  0x96   : > { %v479_v50 = vand.u32 2147483647, %v478_v32  ;;  %v273_v5 = vsel %vm266_vm14, %v269_v56, %v272_v63  ;;  %v606_v32 = vstv %s1344_s20  ;;  %v626_v6 = vstv %s1381_s11  ;;  %s788_s20 = sshll.u32 %s1028_s13, 7  ;;  %p911_p9 = scmp.ne.s32.totalorder %s1418_s18, %s910_s26 }
  0x97   : > { %v274_v8 = vsel %vm263_vm9, nan, %v273_v5  ;;  %s1423_s24 = scalar_lea.hbm %s1485_s2, %s788_s20  ;;  %p918_p13 = scmp.lt.s32.totalorder %s916_s30, %s910_s26 }
  0x98   : > { %v482_v44 = vmul.f32 %v481_v33, %v479_v50  ;;  %v877_v46 = vpop.eup %876  ;;  %v505_v18 = vmul.f32 %v504_v55, %v274_v8  ;;  %v521_v20 = vmul.f32 %v520_v61, %v274_v8  ;;  %v537_v24 = vmul.f32 %v536_v51, %v274_v8  ;;  %p912_p10 = pnand %p911_p9, %p1045_p5 }
  0x99   : > { %v879_v52 = vpop.eup %878  ;;  %v385_v0 = vxor.u32 2147483648, %v877_v46  ;;  %v553_v26 = vmul.f32 %v552_v41, %v274_v8  ;;  %v569_v4 = vmul.f32 %v568_v31, %v274_v8  ;;  %v585_v27 = vmul.f32 %v584_v14, %v274_v8  ;;  %p919_p0 = por %p918_p13, %p917_p12 }
  0x9a   : > { %v483_v48 = vxor.u32 2147483648, %v482_v44  ;;  %v382_v3 = vxor.u32 2147483648, %v879_v52  ;;  %v601_v53 = vmul.f32 %v600_v16, %v274_v8  ;;  %v617_v33 = vmul.f32 %v616_v17, %v274_v8  ;;  %p913_p11 = pneg %p912_p10 }
  0x9b   : > { %v386_v9 = vsel %vm384_vm1, %v385_v0, %v879_v52  ;;  %v622_v50 = vstv %s1352_s3  ;;  %v508_v36 = vadd.f32 %v507_v45, %v505_v18  ;;  %v524_v37 = vadd.f32 %v523_v60, %v521_v20 }
  0x9c   : > { %v484_v19 = vsel %vm401_vm12, %v483_v48, %v482_v44  ;;  %v383_v58 = vsel %vm381_vm0, %v877_v46, %v382_v3  ;;  %v540_v55 = vadd.f32 %v539_v7, %v537_v24  ;;  %v556_v39 = vadd.f32 %v555_v29, %v553_v26  ;;  %p920_p1 = pnand %p919_p0, %p913_p11 }
  0x9d   : > { %v487_v22 = vsel %vm1312_vm13, %v1103_v40, %v484_v19  ;;  %v387_v25 = vsel %vm380_vm2, %v383_v58, %v386_v9  ;;  %v572_v43 = vadd.f32 %v571_v12, %v569_v4  ;;  %v588_v44 = vadd.f32 %v587_v23, %v585_v27 }
  0x9e   : > { %880 = vcosq.f32 %v487_v22  ;;  %v388_v34 = vsel %vm377_vm15, nan, %v387_v25  ;;  %v604_v48 = vadd.f32 %v603_v30, %v601_v53  ;;  %v620_v38 = vadd.f32 %v619_v35, %v617_v33 }
  0x9f   : > { %882 = vsinq.f32 %v487_v22  ;;  %v511_v28 = vmul.f32 %v510_v49, %v388_v34  ;;  %v527_v47 = vmul.f32 %v526_v54, %v388_v34  ;;  %v543_v57 = vmul.f32 %v542_v2, %v388_v34 }
  0xa0   : > { %v559_v61 = vmul.f32 %v558_v42, %v388_v34  ;;  %v575_v60 = vmul.f32 %v574_v13, %v388_v34  ;;  %v591_v63 = vmul.f32 %v590_v21, %v388_v34  ;;  %v607_v19 = vmul.f32 %v606_v32, %v388_v34 }
  0xa1   : > { %v623_v22 = vmul.f32 %v622_v50, %v388_v34  ;;  %v578_v49 = vstv %s1364_s4  ;;  %v594_v3 = vstv %s1373_s5  ;;  %v610_v0 = vstv %s1376_s0 }
  0xa2   : > { %v512_v51 = vadd.f32 %v511_v28, %v508_v36  ;;  %v528_v5 = vadd.f32 %v527_v47, %v524_v37  ;;  %v544_v2 = vadd.f32 %v543_v57, %v540_v55  ;;  %v560_v41 = vadd.f32 %v559_v61, %v556_v39 }
  0xa3   : > { %v576_v29 = vadd.f32 %v575_v60, %v572_v43  ;;  %v592_v8 = vadd.f32 %v591_v63, %v588_v44  ;;  %v608_v58 = vadd.f32 %v607_v19, %v604_v48  ;;  %v624_v9 = vadd.f32 %v623_v22, %v620_v38 }
  0xab   : > { %v881_v46 = vpop.eup %880 }
  0xac   : > { %v883_v45 = vpop.eup %882  ;;  %v499_v52 = vxor.u32 2147483648, %v881_v46 }
  0xad   : > { %v496_v56 = vxor.u32 2147483648, %v883_v45 }
  0xae   : > { %v500_v62 = vsel %vm498_vm6, %v499_v52, %v883_v45 }
  0xaf   : > { %v497_v54 = vsel %vm495_vm5, %v881_v46, %v496_v56 }
  0xb0   : > { %v501_v7 = vsel %vm494_vm4, %v497_v54, %v500_v62 }
  0xb1   : > { %v502_v42 = vsel %vm491_vm3, nan, %v501_v7 }
  0xb2   : > { %v515_v31 = vmul.f32 %v514_v59, %v502_v42  ;;  %v531_v12 = vmul.f32 %v530_v1, %v502_v42  ;;  %v547_v13 = vmul.f32 %v546_v10, %v502_v42  ;;  %v563_v14 = vmul.f32 %v562_v11, %v502_v42 }
  0xb3   : > { %v579_v15 = vmul.f32 %v578_v49, %v502_v42  ;;  %v595_v40 = vmul.f32 %v594_v3, %v502_v42  ;;  %v611_v23 = vmul.f32 %v610_v0, %v502_v42  ;;  %v627_v16 = vmul.f32 %v626_v6, %v502_v42 }
  0xb4   : > { %v516_v59 = vadd.f32 %v515_v31, %v512_v51  ;;  %v532_v1 = vadd.f32 %v531_v12, %v528_v5  ;;  %v548_v10 = vadd.f32 %v547_v13, %v544_v2  ;;  %v564_v17 = vadd.f32 %v563_v14, %v560_v41 }
  0xb5   : > { %v580_v11 = vadd.f32 %v579_v15, %v576_v29  ;;  %v596_v25 = vadd.f32 %v595_v40, %v592_v8  ;;  %v612_v18 = vadd.f32 %v611_v23, %v608_v58  ;;  %v628_v20 = vadd.f32 %v627_v16, %v624_v9 }
  0xb6   : > { %518 = vst.msk [vmem:[%s1404_s9] sm:$0xff] %vm517_vm7, %v516_v59  ;;  %756 = vst.msk [vmem:[%s1404_s9 + $0x8] sm:$0xff] %vm517_vm7, %v532_v1 }
  0xb7   : > { %761 = vst.msk [vmem:[%s1404_s9 + $0x10] sm:$0xff] %vm517_vm7, %v548_v10  ;;  %766 = vst.msk [vmem:[%s1404_s9 + $0x18] sm:$0xff] %vm517_vm7, %v564_v17 }
  0xb8   : > { %771 = vst.msk [vmem:[%s1404_s9 + $0x20] sm:$0xff] %vm517_vm7, %v580_v11  ;;  %776 = vst.msk [vmem:[%s1404_s9 + $0x28] sm:$0xff] %vm517_vm7, %v596_v25 }
  0xb9   : > { %781 = vst.msk [vmem:[%s1404_s9 + $0x30] sm:$0xff] %vm517_vm7, %v612_v18  ;;  %786 = vst.msk [vmem:[%s1404_s9 + $0x38] sm:$0xff] %vm517_vm7, %v628_v20 }
  0xba   : > { %923 = shalt.err (!%p920_p1)
}
  0xbb   : > { %s924_s6 = scalar_lea.hbm %s1423_s24, 1024  ;;  %s928_s14 = scalar_lea.hbm %s1485_s2, 2048 }
  0xbc   : > { %p925_p2 = scmp.ne.s32.totalorder %s1423_s24, %s924_s6  ;;  %p929_p7 = scmp.lt.s32.totalorder %s1423_s24, %s1485_s2 }
  0xbd   : > { %p930_p8 = scmp.lt.s32.totalorder %s928_s14, %s924_s6 }
  0xbe   : > { %p926_p3 = pnand %p925_p2, %p1045_p5 }
  0xbf   : > { %p931_p9 = por %p930_p8, %p929_p7 }
  0xc0   : > { %p927_p4 = pneg %p926_p3 }
  0xc2   : > { %p932_p10 = pnand %p931_p9, %p927_p4 }
  0xc4   : > { %935 = shalt.err (!%p932_p10)
}
  0xc5   : > { %s989_s21 = smov 128   ;;  %s990_s22 = smov 256  }
  0xc6   : > { %s991_s27 = smov 8  }
  0xc7   : > { %811 = dma.vmem_to_hbm [thread:$0]  (%p1045_p5), %s1418_s18, 1024, %s1423_s24, %s1443_s25, %s989_s21, %s990_s22, %s991_s27  }
  0xc8 PF: > { %s1510_s3 = sld [smem:[#allocation11_spill]]  ;;  %p828_p11 = scmp.ge.s32.totalorder %s978_s12, 2 }
  0xca   : > { %p821_p12 = pnand %p828_p11, %p1049_p6 }
  0xcc   : > { %p822_p13 = pneg %p821_p12 }
  0xce   : > { %s659_s5 = sand.u32 1, %s1510_s3  }
  0xcf   : > { %s660_s0 = scalar_lea.sflag [#allocation3], %s659_s5 }
  0xd0   : > { %961 = dma.done.wait (%p822_p13), %s660_s0, 1024  }
  0xd1   : > { %963 = vsyncadd (%p822_p13), %s660_s0, 4294966272  ;;  %s1512_s12 = sld [smem:[#allocation13_spill]]  ;;  %s1515_s9 = smov %s970_s10 }
  0xd2   : > { %s1513_s1 = sld [smem:[#allocation12_spill]] }
  0xd3   : > { %s1514_s11 = sld [smem:[#allocation14_spill]] }
  0xd7   : > { %p14_p0 = scmp.ge.s32.totalorder %s1512_s12, 4  }
  0xd8   : > { %s1516_s10 = smov %s1513_s1 }
  0xd9   :  { %16 = sbr.rel (!%p14_p0) target bundleno = 8 (0x8), region = 77 }
  0xde   :  { %665 = vsyncpa [#allocation3], 1 }
  0xdf   :  { %667 = vsyncpa [#allocation3 + $0x1], 1 }
  0xe0   :  { %668 = vsyncpa [#allocation4], 1 }
  0xe1   :  { %670 = vsyncpa [#allocation4 + $0x1], 1 }
  0xe2   :  { %671 = vsyncpa [#allocation5], 1 }
  0xe3   :  { %673 = vsyncpa [#allocation5 + $0x1], 1 }

</bundles_post_ra>
